<compile_context>
chip_gen: v6e
topology: v6e:2x2x1
jax: 0.10.0
libtpu: 0.0.40
codegen_flags: <defaults>
</compile_context>

<pallas_src>
import jax
import jax.numpy as jnp
from jax.experimental import pallas as pl
from jax.experimental.pallas import tpu as pltpu

LANES = 1024          # lane-dense last dim (multiple of 128) -> unmasked stores
MAX_BLOCK_ROWS = 512  # 512 x 1024 x 4B = 2 MiB per f32 block


def _cdiv(a, b):
    return -(-a // b)


def _round_up(a, b):
    return _cdiv(a, b) * b


def _quant_kernel(int_flag: bool):
    def kernel(params_ref, x_ref, o_ref):
        # params_ref (SMEM): [clamp_bound, scale], hoisted out of the grid loop.
        bound = params_ref[0]
        scale = params_ref[1]
        x = x_ref[...].astype(jnp.float32)        # fused input cast
        x_c = jnp.clip(x, -bound, bound)
        q = jnp.round(x_c / scale)                # true divide; RNE rounding
        out = q if int_flag else q * scale
        o_ref[...] = out.astype(o_ref.dtype)      # fused output cast
    return kernel


def _bound_and_scale(x, *, symmetric, bit, clamp_std, th_point, th_scale,
                     all_positive):
    """Scalar statistics of data_quantization_int (one reduction pass)."""
    if all_positive and symmetric:
        raise ValueError("Positive quantization cannot be symmetric")
    if (clamp_std is not None and clamp_std != 0) and (th_scale is not None):
        raise ValueError(
            "clamp_std and th_scale, only one clamp method can be used.")

    max_data = jnp.max(x).astype(jnp.float32)
    min_data = jnp.min(x).astype(jnp.float32)

    if clamp_std is not None and clamp_std != 0:
        std = jnp.std(x.astype(jnp.float32), ddof=1)   # torch unbiased std
        bound = jnp.float32(clamp_std) * std
    else:
        absmax = jnp.abs(max_data)
        absmin = jnp.abs(min_data)
        if th_point == 'min':
            bound = jnp.where(min_data * max_data < 0,
                              jnp.minimum(absmax, absmin),
                              jnp.maximum(absmax, absmin))
        else:
            bound = jnp.maximum(absmax, absmin)
        if th_scale is not None:
            bound = bound * jnp.float32(th_scale)

    # Stats of clamp(x, -bound, bound) derived from the scalar extremes
    # (clamp is monotone) -> no second pass over the data.
    c_max = jnp.clip(max_data, -bound, bound)
    c_min = jnp.clip(min_data, -bound, bound)
    c_absmax = jnp.maximum(jnp.abs(c_max), jnp.abs(c_min))

    if all_positive:
        # TODO(synk): original module raises if x.min() < 0 (data-dependent
        # host-side check); not reproducible at trace time.
        data_range = c_max
        quant_range = 2 ** bit - 1
    elif symmetric:
        data_range = 2.0 * c_absmax
        quant_range = 2 ** bit - 2
    else:
        raise NotImplementedError(
            "asymmetric uniform quantizer: the original module raises "
            "ValueError for any nonzero zero_point, so there is no valid "
            "forward pass to translate.")

    scale = jnp.where(data_range == 0, jnp.float32(1.0),
                      data_range / jnp.float32(quant_range))
    return bound.astype(jnp.float32), scale.astype(jnp.float32)


def uniform_quantize(x, *, symmetric=False, bit=4, clamp_std=0, th_point='max',
                     th_scale=None, all_positive=False, int_flag=False):
    """Forward pass of uniform_quantizer (noise_scale=0)."""
    bound, scale = _bound_and_scale(
        x, symmetric=symmetric, bit=bit, clamp_std=clamp_std,
        th_point=th_point, th_scale=th_scale, all_positive=all_positive)

    orig_shape = x.shape
    dt = x.dtype
    itemsize = jnp.dtype(dt).itemsize
    n = int(x.size)

    # Row granule so sublane packing works for the native dtype tiling.
    granule = max(8, 8 * (4 // max(1, itemsize)))   # f32 -> 8, bf16/f16 -> 16

    rows_needed = max(1, _cdiv(n, LANES))
    num_blocks = _cdiv(rows_needed, MAX_BLOCK_ROWS)
    block_rows = _round_up(_cdiv(rows_needed, num_blocks), granule)
    rows = num_blocks * block_rows
    padded_n = rows * LANES

    flat = x.reshape(-1)
    if padded_n != n:
        flat = jnp.pad(flat, (0, padded_n - n))     # zeros quantize to 0
    x2d = flat.reshape(rows, LANES)

    params = jnp.stack([bound, scale]).astype(jnp.float32)

    cost = pl.CostEstimate(
        flops=int(5 * padded_n),
        transcendentals=0,
        bytes_accessed=int(2 * padded_n * itemsize),
    )

    out2d = pl.pallas_call(
        _quant_kernel(bool(int_flag)),
        out_shape=jax.ShapeDtypeStruct((rows, LANES), dt),
        grid_spec=pltpu.PrefetchScalarGridSpec(
            num_scalar_prefetch=0,
            grid=(num_blocks,),
            in_specs=[
                pl.BlockSpec(memory_space=pltpu.SMEM),              # [bound, scale]
                pl.BlockSpec((block_rows, LANES), lambda i: (i, 0)),  # x tile
            ],
            out_specs=pl.BlockSpec((block_rows, LANES), lambda i: (i, 0)),
        ),
        compiler_params=pltpu.CompilerParams(
            dimension_semantics=("parallel",),
            vmem_limit_bytes=32 * 1024 * 1024,
        ),
        cost_estimate=cost,
    )(params, x2d)

    out_flat = out2d.reshape(-1)
    if padded_n != n:
        out_flat = out_flat[:n]
    out = out_flat.reshape(orig_shape)

    if int_flag:
        return out, scale
    return out


def _reference(x, **cfg):
    """Pure-jnp transcription of the forward value (f32 intermediates)."""
    bound, scale = _bound_and_scale(x, **cfg)
    x_c = jnp.clip(x.astype(jnp.float32), -bound, bound)
    q = jnp.round(x_c / scale)
    return (q * scale).astype(x.dtype)


# TODO(synk): add_noise branch (noise_scale != 0) uses torch.randn_like; a
# Pallas version would use pltpu.prng_seed/prng_random_bits, but the module
# default (noise_scale=0) never exercises it, so it is not implemented here.

if __name__ == "__main__":
    key = jax.random.PRNGKey(0)

    # Tensor to be quantized (e.g. a conv weight / activation), NCHW-shaped.
    x = jax.random.normal(key, (2, 4, 16, 16), dtype=jnp.float32) * 0.5

    # Symmetric 4-bit config (the default asymmetric config raises ValueError
    # in the original PyTorch module for any nonzero zero_point).
    cfg = dict(symmetric=True, bit=4, clamp_std=0, th_point='max',
               th_scale=None, all_positive=False)

    out = uniform_quantize(x, **cfg)
    out = jax.block_until_ready(out)
    ref = _reference(x, **cfg)
    assert out.shape == x.shape and out.dtype == x.dtype
    assert jnp.allclose(out, ref, atol=1e-6, rtol=1e-6), "f32 mismatch vs reference"

    # bf16 path: exercises the fused in-kernel casts and 16-row sublane granule.
    xb = x.astype(jnp.bfloat16)
    outb = jax.block_until_ready(uniform_quantize(xb, **cfg))
    refb = _reference(xb, **cfg)
    _, scale_b = _bound_and_scale(xb, **cfg)
    max_abs_diff = float(jnp.max(jnp.abs(outb.astype(jnp.float32)
                                         - refb.astype(jnp.float32))))
    # Allow at most one quantization-level flip (exact-half divide boundaries).
    assert outb.dtype == jnp.bfloat16 and outb.shape == x.shape
    assert max_abs_diff <= 1.01 * float(scale_b) + 1e-6, "bf16 mismatch vs reference"

    print("KERNEL_OK")
</pallas_src>

<mosaic_0001>
module attributes {stable_mosaic.version = 11 : i64} {
  func.func @kernel(%arg0: i32, %arg1: memref<2xf32, #tpu.memory_space<smem>>, %arg2: memref<8x1024xf32, #tpu.memory_space<vmem>>, %arg3: memref<8x1024xf32, #tpu.memory_space<vmem>>) attributes {dimension_semantics = [#tpu.dimension_semantics<parallel>], iteration_bounds = array<i64: 1>, scalar_prefetch = 0 : i64, scratch_operands = 0 : i64, tpu.core_type = #tpu.core_type<tc>, window_params = [{transform_indices = @transform_0, window_bounds = array<i64: 2>}, {transform_indices = @transform_1, window_bounds = array<i64: 8, 1024>}, {transform_indices = @transform_2, window_bounds = array<i64: 8, 1024>}]} {
    %c0 = arith.constant 0 : index
    %0 = memref.load %arg1[%c0] : memref<2xf32, #tpu.memory_space<smem>>
    %c1 = arith.constant 1 : index
    %1 = memref.load %arg1[%c1] : memref<2xf32, #tpu.memory_space<smem>>
    %c0_0 = arith.constant 0 : index
    %c0_1 = arith.constant 0 : index
    %2 = vector.load %arg2[%c0_0, %c0_1] : memref<8x1024xf32, #tpu.memory_space<vmem>>, vector<8x1024xf32>
    %cst = arith.constant 0.000000e+00 : f32
    %3 = arith.subf %cst, %0 : f32
    %4 = vector.broadcast %3 : f32 to vector<8x1024xf32>
    %5 = arith.maximumf %4, %2 : vector<8x1024xf32>
    %6 = vector.broadcast %0 : f32 to vector<8x1024xf32>
    %7 = arith.minimumf %6, %5 : vector<8x1024xf32>
    %8 = vector.broadcast %1 : f32 to vector<8x1024xf32>
    %9 = arith.divf %7, %8 : vector<8x1024xf32>
    %10 = math.roundeven %9 : vector<8x1024xf32>
    %11 = vector.broadcast %1 : f32 to vector<8x1024xf32>
    %12 = arith.mulf %10, %11 : vector<8x1024xf32>
    %c0_2 = arith.constant 0 : index
    %c0_3 = arith.constant 0 : index
    %13 = vector.load %arg3[%c0_2, %c0_3] : memref<8x1024xf32, #tpu.memory_space<vmem>>, vector<8x1024xf32>
    tpu.vector_store %arg3[%c0_2, %c0_3], %12 {strides = array<i32>} : memref<8x1024xf32, #tpu.memory_space<vmem>>, vector<8x1024xf32>,
    return
  }
  func.func @transform_0(%arg0: i32) -> i32 {
    %c0_i32 = arith.constant 0 : i32
    %c0_i32_0 = arith.constant 0 : i32
    return %c0_i32 : i32
  }
  func.func @transform_1(%arg0: i32) -> (i32, i32) {
    %c0_i32 = arith.constant 0 : i32
    %c0_i32_0 = arith.constant 0 : i32
    return %arg0, %c0_i32 : i32, i32
  }
  func.func @transform_2(%arg0: i32) -> (i32, i32) {
    %c0_i32 = arith.constant 0 : i32
    %c0_i32_0 = arith.constant 0 : i32
    return %arg0, %c0_i32 : i32, i32
  }
}

</mosaic_0001>

<bundles_post_ra>
// kernel: tpu_custom_call.1
= control target key start
LH: loop header
LB: loop body
LE: loop exit
PB: predicated region body
PF: predicated region fallthrough
CT: control target
= control target key end

     0   :  { %7 = vsyncpa [#allocation5], 0  ;;  %s330_s0 = inlined_call_operand.hbm [shape: f32[2], index: 0, kind: input, shape index: {}]   ;;  %s331_s1 = inlined_call_operand.hbm [shape: f32[8,1024], index: 1, kind: input, shape index: {}]   ;;  %s332_s2 = inlined_call_operand.hbm [shape: f32[8,1024], index: 2, kind: output, shape index: {}]  }
   0x1   :  { %8 = vsyncpa [#allocation3], 0 }
   0x2   :  { %9 = vsyncpa [#allocation4], 0  ;;  %s238_s9 = smov [#allocation2]   ;;  %s239_s12 = smov [#allocation6]  }
   0x3   :  { %17 = dma.hbm_to_smem %s330_s0, 16, %s238_s9, [#allocation5]  }
   0x4   :  { %s24_s13 = sshll.u32 %s239_s12, 4  ;;  %s25_s13 = int_to_ptr.vmem [resolvable:$true] %s24_s13 }
   0x5   :  { %s200_s14 = scalar_lea.vmem %s25_s13, 1024  ;;  %p205_p1 = scmp.lt.s32.totalorder %s25_s13, %s25_s13 }
   0x6   :  { %p201_p0 = scmp.ne.s32.totalorder %s25_s13, %s200_s14  ;;  %p206_p2 = scmp.lt.s32.totalorder %s200_s14, %s200_s14 }
   0x8   :  { %p207_p3 = por %p206_p2, %p205_p1 }
   0xa   :  { %p208_p4 = pnand %p207_p3, %p201_p0 }
   0xc   :  { %211 = shalt.err (!%p208_p4)
}
   0xd   :  { %27 = dma.hbm_to_vmem [thread:$0]  %s331_s1, 1024, %s25_s13, [#allocation3]  }
   0xe   :  { %232 = dma.done.wait [#allocation5], 16  }
   0xf   :  { %233 = vsyncadd [#allocation5], 4294967280 }
  0x10   :  { %234 = dma.done.wait [#allocation3], 1024  }
  0x11   :  { %235 = vsyncadd [#allocation3], 4294966272 }
  0x12   :  { %34 = sfence }
  0x13   :  { %s35_s0 = sld [smem:[#allocation2]]  ;;  %v37_v1 = vld [vmem:[#allocation6] sm:$0xff]  ;;  %v38_v3 = vld [vmem:[#allocation6 + $0x8] sm:$0xff]  ;;  %v39_v4 = vld [vmem:[#allocation6 + $0x10] sm:$0xff]  ;;  %s240_s1 = smov [#allocation7]  }
  0x14   :  { %s114_s17 = sld [smem:[#allocation2 + $0x1]]  ;;  %v40_v5 = vld [vmem:[#allocation6 + $0x18] sm:$0xff]  ;;  %v41_v6 = vld [vmem:[#allocation6 + $0x20] sm:$0xff]  ;;  %v42_v7 = vld [vmem:[#allocation6 + $0x28] sm:$0xff]  ;;  %s104_s19 = sshll.u32 %s240_s1, 4  ;;  %s105_s19 = int_to_ptr.vmem [resolvable:$true] %s104_s19 }
  0x15   :  { %v43_v8 = vld [vmem:[#allocation6 + $0x30] sm:$0xff]  ;;  %v44_v12 = vld [vmem:[#allocation6 + $0x38] sm:$0xff]  ;;  %s212_s20 = scalar_lea.vmem %s105_s19, 1024  ;;  %p217_p6 = scmp.lt.s32.totalorder %s105_s19, %s105_s19 }
  0x16   :  { %p213_p5 = scmp.ne.s32.totalorder %s105_s19, %s212_s20  ;;  %p218_p7 = scmp.lt.s32.totalorder %s212_s20, %s212_s20 }
  0x18   :  { %p219_p8 = por %p218_p7, %p217_p6 }
  0x19   :  { %s45_s18 = ssub.f32 0.0, %s35_s0  ;;  %v55_v13 = vstv %s35_s0 }
  0x1a   :  { %v262_v0 = vstv %s114_s17  ;;  %p220_p9 = pnand %p219_p8, %p213_p5 }
  0x1b   :  { %182 = vrcp.f32 %v262_v0  ;;  %v46_v2 = vstv %s45_s18 }
  0x1c   :  { %v47_v9 = vmax.f32 %v46_v2, %v37_v1  ;;  %v48_v10 = vmax.f32 %v46_v2, %v38_v3  ;;  %v49_v11 = vmax.f32 %v46_v2, %v39_v4  ;;  %v50_v14 = vmax.f32 %v46_v2, %v40_v5 }
  0x1d   :  { %v51_v15 = vmax.f32 %v46_v2, %v41_v6  ;;  %v52_v16 = vmax.f32 %v46_v2, %v42_v7  ;;  %v53_v17 = vmax.f32 %v46_v2, %v43_v8  ;;  %v54_v18 = vmax.f32 %v46_v2, %v44_v12 }
  0x1e   :  { %v56_v19 = vmin.f32 %v55_v13, %v47_v9  ;;  %v57_v20 = vmin.f32 %v55_v13, %v48_v10  ;;  %v58_v21 = vmin.f32 %v55_v13, %v49_v11  ;;  %v59_v22 = vmin.f32 %v55_v13, %v50_v14 }
  0x1f   :  { %v60_v23 = vmin.f32 %v55_v13, %v51_v15  ;;  %v61_v24 = vmin.f32 %v55_v13, %v52_v16  ;;  %v62_v25 = vmin.f32 %v55_v13, %v53_v17  ;;  %v63_v27 = vmin.f32 %v55_v13, %v54_v18 }
  0x28   :  { %v183_v26 = vpop.eup %182 }
  0x29   :  { %v66_v28 = vmul.f32 %v183_v26, %v56_v19  ;;  %v67_v29 = vmul.f32 %v183_v26, %v57_v20  ;;  %v68_v30 = vmul.f32 %v183_v26, %v58_v21  ;;  %v69_v31 = vmul.f32 %v183_v26, %v59_v22 }
  0x2a   :  { %v70_v32 = vmul.f32 %v183_v26, %v60_v23  ;;  %v265_v33 = vmul.f32 %v183_v26, %v61_v24  ;;  %v267_v37 = vmul.f32 %v183_v26, %v62_v25  ;;  %v269_v41 = vmul.f32 %v183_v26, %v63_v27 }
  0x2b   :  { %v115_v34 = vand.u32 2147483647, %v66_v28  ;;  %v117_v35 = vcvt.f32.s32 %v66_v28  ;;  %v123_v36 = vand.u32 2147483647, %v67_v29  ;;  %v125_v38 = vcvt.f32.s32 %v67_v29 }
  0x2c   :  { %v131_v39 = vand.u32 2147483647, %v68_v30  ;;  %v133_v40 = vcvt.f32.s32 %v68_v30  ;;  %v120_v44 = vand.u32 2147483648, %v66_v28  ;;  %v128_v45 = vand.u32 2147483648, %v67_v29 }
  0x2d   :  { %vm271_vm0 = vcmp.lt.f32.partialorder %v115_v34, 8388608.0  ;;  %v118_v43 = vcvt.s32.f32 %v117_v35  ;;  %v126_v46 = vcvt.s32.f32 %v125_v38  ;;  %v136_v48 = vand.u32 2147483648, %v68_v30 }
  0x2e   :  { %v134_v47 = vcvt.s32.f32 %v133_v40  ;;  %v139_v49 = vand.u32 2147483647, %v69_v31  ;;  %vm275_vm1 = vcmp.lt.f32.partialorder %v123_v36, 8388608.0  ;;  %vm279_vm2 = vcmp.lt.f32.partialorder %v131_v39, 8388608.0 }
  0x2f   :  { %v119_v50 = vand.u32 2147483647, %v118_v43  ;;  %v141_v53 = vcvt.f32.s32 %v69_v31  ;;  %v127_v54 = vand.u32 2147483647, %v126_v46  ;;  %v144_v56 = vand.u32 2147483648, %v69_v31 }
  0x30   :  { %v135_v55 = vand.u32 2147483647, %v134_v47  ;;  %v149_v57 = vcvt.f32.s32 %v70_v32  ;;  %vm283_vm3 = vcmp.lt.f32.partialorder %v139_v49, 8388608.0  ;;  %v147_v61 = vand.u32 2147483647, %v70_v32 }
  0x31   :  { %v121_v58 = vor.u32 %v120_v44, %v119_v50  ;;  %v142_v60 = vcvt.s32.f32 %v141_v53  ;;  %v129_v62 = vor.u32 %v128_v45, %v127_v54  ;;  %v152_v2 = vand.u32 2147483648, %v70_v32 }
  0x32   :  { %v137_v63 = vor.u32 %v136_v48, %v135_v55  ;;  %v150_v1 = vcvt.s32.f32 %v149_v57  ;;  %v155_v5 = vand.u32 2147483647, %v265_v33  ;;  %v157_v6 = vcvt.f32.s32 %v265_v33 }
  0x33   :  { %v122_v3 = vsel %vm271_vm0, %v121_v58, %v66_v28  ;;  %v143_v4 = vand.u32 2147483647, %v142_v60  ;;  %v130_v8 = vsel %vm275_vm1, %v129_v62, %v67_v29  ;;  %vm298_vm4 = vcmp.lt.f32.partialorder %v147_v61, 8388608.0 }
  0x34   :  { %v82_v7 = vmul.f32 %v122_v3, %v262_v0  ;;  %v138_v9 = vsel %vm279_vm2, %v137_v63, %v68_v30  ;;  %v151_v10 = vand.u32 2147483647, %v150_v1  ;;  %v83_v11 = vmul.f32 %v130_v8, %v262_v0 }
  0x35   :  { %v84_v12 = vmul.f32 %v138_v9, %v262_v0  ;;  %v145_v13 = vor.u32 %v144_v56, %v143_v4  ;;  %v158_v16 = vcvt.s32.f32 %v157_v6  ;;  %v160_v17 = vand.u32 2147483648, %v265_v33 }
  0x36   :  { %90 = vst [vmem:[#allocation7] sm:$0xff] %v82_v7  ;;  %v153_v15 = vor.u32 %v152_v2, %v151_v10  ;;  %v165_v18 = vcvt.f32.s32 %v267_v37  ;;  %91 = vst [vmem:[#allocation7 + $0x8] sm:$0xff] %v83_v11  ;;  %vm306_vm5 = vcmp.lt.f32.partialorder %v155_v5, 8388608.0  ;;  %v163_v21 = vand.u32 2147483647, %v267_v37 }
  0x37   :  { %92 = vst [vmem:[#allocation7 + $0x10] sm:$0xff] %v84_v12  ;;  %v146_v19 = vsel %vm283_vm3, %v145_v13, %v69_v31  ;;  %v173_v22 = vcvt.f32.s32 %v269_v41  ;;  %v159_v25 = vand.u32 2147483647, %v158_v16  ;;  %v171_v26 = vand.u32 2147483647, %v269_v41 }
  0x38   :  { %v85_v23 = vmul.f32 %v146_v19, %v262_v0  ;;  %v154_v24 = vsel %vm298_vm4, %v153_v15, %v70_v32  ;;  %v166_v28 = vcvt.s32.f32 %v165_v18  ;;  %v168_v29 = vand.u32 2147483648, %v267_v37 }
  0x39   :  { %v86_v27 = vmul.f32 %v154_v24, %v262_v0  ;;  %v174_v30 = vcvt.s32.f32 %v173_v22  ;;  %v161_v31 = vor.u32 %v160_v17, %v159_v25  ;;  %v176_v34 = vand.u32 2147483648, %v269_v41 }
  0x3a   :  { %93 = vst [vmem:[#allocation7 + $0x18] sm:$0xff] %v85_v23  ;;  %v167_v35 = vand.u32 2147483647, %v166_v28  ;;  %vm164_vm6 = vcmp.lt.f32.partialorder %v163_v21, 8388608.0  ;;  %vm172_vm7 = vcmp.lt.f32.partialorder %v171_v26, 8388608.0 }
  0x3b   :  { %94 = vst [vmem:[#allocation7 + $0x20] sm:$0xff] %v86_v27  ;;  %v175_v36 = vand.u32 2147483647, %v174_v30  ;;  %v162_v32 = vsel %vm306_vm5, %v161_v31, %v265_v33 }
  0x3c   :  { %v87_v38 = vmul.f32 %v162_v32, %v262_v0  ;;  %v169_v39 = vor.u32 %v168_v29, %v167_v35 }
  0x3d   :  { %v177_v40 = vor.u32 %v176_v34, %v175_v36 }
  0x3e   :  { %95 = vst [vmem:[#allocation7 + $0x28] sm:$0xff] %v87_v38  ;;  %v170_v42 = vsel %vm164_vm6, %v169_v39, %v267_v37 }
  0x3f   :  { %v178_v43 = vsel %vm172_vm7, %v177_v40, %v269_v41  ;;  %v88_v44 = vmul.f32 %v170_v42, %v262_v0 }
  0x40   :  { %v89_v45 = vmul.f32 %v178_v43, %v262_v0 }
  0x41   :  { %96 = vst [vmem:[#allocation7 + $0x30] sm:$0xff] %v88_v44 }
  0x42   :  { %97 = vst [vmem:[#allocation7 + $0x38] sm:$0xff] %v89_v45 }
  0x43   :  { %223 = shalt.err (!%p220_p9)
}
  0x44   :  { %107 = dma.vmem_to_hbm [thread:$0]  %s105_s19, 1024, %s332_s2, [#allocation4]  }
  0x45   :  { %236 = dma.done.wait [#allocation4], 1024  }
  0x46   :  { %237 = vsyncadd [#allocation4], 4294966272 }
  0x47   :  { %111 = vsyncpa [#allocation3], 1 }
  0x48   :  { %112 = vsyncpa [#allocation4], 1 }
  0x49   :  { %113 = vsyncpa [#allocation5], 1 }

</bundles_post_ra>
